<compile_context>
chip_gen: v6e
topology: v6e:2x2x1
jax: 0.10.0
libtpu: 0.0.40
codegen_flags: <defaults>
</compile_context>

<pallas_src>
import functools

import jax
import jax.numpy as jnp
from jax.experimental import pallas as pl
from jax.experimental.pallas import tpu as pltpu


def _round_up(v, m):
    return ((v + m - 1) // m) * m


# ---------------------------------------------------------------------------
# Per-generation VMEM budgets (dtype-aware tile sizing uses these)
# ---------------------------------------------------------------------------
def _vmem_capacity_bytes():
    """Best-effort physical VMEM size for the local TPU generation."""
    try:
        cap = int(getattr(pltpu.get_tpu_info(), "vmem_capacity_bytes", 0))
        if cap > 0:
            return cap
    except Exception:
        pass
    try:
        kind = jax.devices()[0].device_kind.lower()
        if "v7" in kind:
            return 64 * 1024 * 1024
        if "v5" in kind or "v6" in kind:
            return 128 * 1024 * 1024
    except Exception:
        pass
    return 64 * 1024 * 1024  # conservative default (v7x per-TC size)


def _vmem_budgets():
    cap = _vmem_capacity_bytes()
    budget = max(16 * 1024 * 1024, int(cap * 0.40))        # tile working set
    limit = max(budget + 8 * 1024 * 1024, int(cap * 0.75))  # scoped VMEM limit
    return budget, min(limit, cap)


# ---------------------------------------------------------------------------
# In-kernel helpers
# ---------------------------------------------------------------------------
def _layer_norm_rows(x, alpha, beta, *, eps, d_valid, approx):
    """LayerNorm over last axis — torch semantics (unbiased std, eps on std).

    Columns >= d_valid are zero padding and are excluded from the statistics.
    alpha is folded into the per-row reciprocal scale.
    """
    xf = x.astype(jnp.float32)
    d_pad = xf.shape[-1]
    mean = jnp.sum(xf, axis=-1, keepdims=True) * (1.0 / d_valid)
    diff = xf - mean
    if d_valid != d_pad:
        col = jax.lax.broadcasted_iota(jnp.int32, xf.shape, xf.ndim - 1)
        diff = jnp.where(col < d_valid, diff, 0.0)
    var_unbiased = jnp.sum(diff * diff, axis=-1, keepdims=True) * (1.0 / (d_valid - 1))
    std = jnp.sqrt(var_unbiased)
    scale = alpha * pl.reciprocal(std + eps, approx=approx)
    return diff * scale + beta


def _dropout(y, seed, rate, uid):
    """Inverted dropout via TPU hardware PRNG; uint32 threshold compare."""
    # TODO(synk): the mask depends on the tile/grid shape via `uid`; a
    # tile-invariant stream would need pltpu.sample_block-style keying.
    pltpu.prng_seed(seed + uid)
    bits = pltpu.bitcast(pltpu.prng_random_bits(y.shape), jnp.uint32)
    threshold = jnp.uint32(min(int(rate * (1 << 32)), (1 << 32) - 1))
    keep = bits >= threshold  # P(keep) = 1 - rate
    return jnp.where(keep, y * (1.0 / (1.0 - rate)), 0.0)


# ---------------------------------------------------------------------------
# Fused kernel: LN -> dense sublayer -> dropout -> residual add
# ---------------------------------------------------------------------------
def _fused_kernel(alpha_ref, beta_ref, seed_ref, x_ref, w_ref, b_ref, o_ref,
                  ln_ref, *, eps, rate, training, tn, d_valid, approx):
    j = pl.program_id(1)

    # LayerNorm once per row tile; resident in VMEM (x's native dtype, so bf16
    # inputs feed the MXU without an f32 upcast) across the output-column axis.
    @pl.when(j == 0)
    def _():
        ln_ref[...] = _layer_norm_rows(
            x_ref[...], alpha_ref[0], beta_ref[0],
            eps=eps, d_valid=d_valid, approx=approx).astype(ln_ref.dtype)

    # Dense sublayer tile on the MXU: native-dtype operands, f32 accumulation.
    y = jnp.dot(ln_ref[...], w_ref[...], preferred_element_type=jnp.float32)
    y = y + b_ref[...].astype(jnp.float32)

    if training and rate > 0.0:
        uid = pl.program_id(0) * pl.num_programs(1) + j
        y = _dropout(y, seed_ref[0], rate, uid)

    # Residual: slice matching columns from the already-resident x row tile.
    col = pl.multiple_of(j * tn, tn)
    x_res = x_ref[:, pl.ds(col, tn)].astype(jnp.float32)
    o_ref[...] = (x_res + y).astype(o_ref.dtype)


def _choose_tiles(n, d_pad, x_isz, w_isz, budget):
    """Pick (row tile tm, output-column tile tn), dtype- and chip-aware."""
    w_bytes = d_pad * d_pad * w_isz
    if w_bytes <= min(budget // 4, 16 * 1024 * 1024):
        tn = d_pad                      # W fully VMEM-resident, single j step
    elif d_pad % 512 == 0:
        tn = 512
    elif d_pad % 256 == 0:
        tn = 256
    else:
        tn = 128                        # d_pad is always a multiple of 128

    def working_set(tm_, tn_):
        x_blk = 2 * tm_ * d_pad * x_isz          # double-buffered x rows
        w_blk = 2 * d_pad * tn_ * w_isz          # double-buffered W tile
        b_blk = 2 * tn_ * w_isz
        o_blk = 2 * tm_ * tn_ * x_isz
        ln = tm_ * d_pad * x_isz                 # LN scratch (x dtype)
        return x_blk + w_blk + b_blk + o_blk + ln

    tm = _round_up(min(n, 512), 8)
    while tm > 8 and working_set(tm, tn) > budget:
        tm = max(8, _round_up(tm // 2, 8))
    while tn > 128 and working_set(tm, tn) > budget:
        tn = tn // 2 if (tn // 2) % 128 == 0 else 128

    # Megacore (v7x): ensure the "parallel" row axis has >= 2 tiles.
    if tm >= n and n > 8:
        tm = max(8, _round_up(-(-n // 2), 8))
    # Prefer a row tile dividing n exactly (skip host-side pad / [:n] slice).
    if n % tm != 0:
        for cand in range(tm, 7, -8):
            if n % cand == 0:
                tm = cand
                break
    return tm, tn


def fused_residual_dense(x, w, b, alpha, beta, *, eps=1e-6, rate=0.1,
                         training=False, seed=0):
    """x: [B, S, D].  Computes x + dropout(LayerNorm(x) @ W + b) in one kernel."""
    bsz, s, d = x.shape
    assert w.shape == (d, d), "residual needs the dense sublayer to preserve D"
    n = bsz * s
    x2 = x.reshape(n, d)

    budget, vmem_limit = _vmem_budgets()

    # Lane padding: keep MXU tiles and output stores 128-lane dense.  LN stats
    # are masked to the valid columns inside the kernel; padded W rows/cols and
    # bias entries are zero so they contribute nothing.
    d_pad = _round_up(d, 128)
    b2 = jnp.asarray(b, dtype=w.dtype).reshape(1, d)
    if d_pad != d:
        x2 = jnp.pad(x2, ((0, 0), (0, d_pad - d)))
        w = jnp.pad(w, ((0, d_pad - d), (0, d_pad - d)))
        b2 = jnp.pad(b2, ((0, 0), (0, d_pad - d)))

    tm, tn = _choose_tiles(n, d_pad, x.dtype.itemsize, w.dtype.itemsize, budget)
    n_pad = _round_up(n, tm)
    if n_pad != n:
        x2 = jnp.pad(x2, ((0, n_pad - n), (0, 0)))
    ni, nj = n_pad // tm, d_pad // tn

    alpha = jnp.asarray(alpha, jnp.float32).reshape(1)
    beta = jnp.asarray(beta, jnp.float32).reshape(1)
    seed_arr = jnp.asarray([seed], jnp.int32)
    approx = bool(x.dtype == jnp.bfloat16)  # EUP rcp error << bf16 rounding

    out2 = pl.pallas_call(
        functools.partial(_fused_kernel, eps=eps, rate=rate, training=training,
                          tn=tn, d_valid=d, approx=approx),
        out_shape=jax.ShapeDtypeStruct((n_pad, d_pad), x.dtype),
        grid=(ni, nj),
        in_specs=[
            pl.BlockSpec(memory_space=pltpu.MemorySpace.SMEM),   # alpha
            pl.BlockSpec(memory_space=pltpu.MemorySpace.SMEM),   # beta
            pl.BlockSpec(memory_space=pltpu.MemorySpace.SMEM),   # seed
            pl.BlockSpec((tm, d_pad), lambda i, j: (i, 0)),      # x rows (resident over j)
            pl.BlockSpec((d_pad, tn), lambda i, j: (0, j)),      # W (resident when tn==d_pad)
            pl.BlockSpec((1, tn), lambda i, j: (0, j)),          # bias column tile
        ],
        out_specs=pl.BlockSpec((tm, tn), lambda i, j: (i, j)),
        scratch_shapes=[pltpu.VMEM((tm, d_pad), x.dtype)],       # LN rows, native dtype
        compiler_params=pltpu.CompilerParams(
            dimension_semantics=("parallel", "arbitrary"),
            vmem_limit_bytes=vmem_limit),
    )(alpha, beta, seed_arr, x2, w, b2)

    if n_pad != n or d_pad != d:
        out2 = out2[:n, :d]
    return out2.reshape(bsz, s, d)


# ---------------------------------------------------------------------------
# Generic (unfused) path for arbitrary sublayer callables
# ---------------------------------------------------------------------------
def _layernorm_kernel(alpha_ref, beta_ref, x_ref, o_ref, *, eps, approx):
    o_ref[...] = _layer_norm_rows(
        x_ref[...], alpha_ref[0], beta_ref[0],
        eps=eps, d_valid=x_ref.shape[-1], approx=approx).astype(o_ref.dtype)


def _residual_kernel(seed_ref, x_ref, y_ref, o_ref, *, rate, training):
    x = x_ref[...].astype(jnp.float32)
    y = y_ref[...].astype(jnp.float32)
    if training and rate > 0.0:
        y = _dropout(y, seed_ref[0], rate, pl.program_id(0))
    o_ref[...] = (x + y).astype(o_ref.dtype)


def _choose_row_tile(n, d, n_arrays, itemsize, budget):
    tm = _round_up(min(n, 1024), 8)
    while tm > 8 and (2 * n_arrays * tm * d * itemsize + tm * d * 4) > budget:
        tm = max(8, _round_up(tm // 2, 8))
    if n % tm != 0:
        for cand in range(tm, 7, -8):
            if n % cand == 0:
                tm = cand
                break
    return tm


def layer_norm(x2, alpha, beta, *, eps=1e-6):
    n, d = x2.shape
    budget, vmem_limit = _vmem_budgets()
    tm = _choose_row_tile(n, d, 2, x2.dtype.itemsize, budget)
    n_pad = _round_up(n, tm)
    xp = jnp.pad(x2, ((0, n_pad - n), (0, 0))) if n_pad != n else x2
    alpha = jnp.asarray(alpha, jnp.float32).reshape(1)
    beta = jnp.asarray(beta, jnp.float32).reshape(1)
    approx = bool(x2.dtype == jnp.bfloat16)
    out = pl.pallas_call(
        functools.partial(_layernorm_kernel, eps=eps, approx=approx),
        out_shape=jax.ShapeDtypeStruct((n_pad, d), x2.dtype),
        grid=(n_pad // tm,),
        in_specs=[
            pl.BlockSpec(memory_space=pltpu.MemorySpace.SMEM),
            pl.BlockSpec(memory_space=pltpu.MemorySpace.SMEM),
            pl.BlockSpec((tm, d), lambda i: (i, 0)),
        ],
        out_specs=pl.BlockSpec((tm, d), lambda i: (i, 0)),
        compiler_params=pltpu.CompilerParams(
            dimension_semantics=("parallel",),
            vmem_limit_bytes=vmem_limit),
    )(alpha, beta, xp)
    return out[:n] if n_pad != n else out


def residual_add(x2, y2, *, rate=0.1, training=False, seed=0):
    n, d = x2.shape
    budget, vmem_limit = _vmem_budgets()
    tm = _choose_row_tile(n, d, 3, x2.dtype.itemsize, budget)
    n_pad = _round_up(n, tm)
    if n_pad != n:
        pad = ((0, n_pad - n), (0, 0))
        x2 = jnp.pad(x2, pad)
        y2 = jnp.pad(y2, pad)
    seed_arr = jnp.asarray([seed], jnp.int32)
    out = pl.pallas_call(
        functools.partial(_residual_kernel, rate=rate, training=training),
        out_shape=jax.ShapeDtypeStruct((n_pad, d), x2.dtype),
        grid=(n_pad // tm,),
        in_specs=[
            pl.BlockSpec(memory_space=pltpu.MemorySpace.SMEM),
            pl.BlockSpec((tm, d), lambda i: (i, 0)),
            pl.BlockSpec((tm, d), lambda i: (i, 0)),
        ],
        out_specs=pl.BlockSpec((tm, d), lambda i: (i, 0)),
        compiler_params=pltpu.CompilerParams(
            dimension_semantics=("parallel",),
            vmem_limit_bytes=vmem_limit),
    )(seed_arr, x2, y2)
    return out[:n] if n_pad != n else out


def residual_connection(x, sublayer, alpha, beta, *, eps=1e-6, rate=0.1,
                        training=False, seed=0):
    """Generic path: x [B,S,D]; sublayer is any callable [B*S, D] -> [B*S, D]."""
    bsz, s, d = x.shape
    x2 = x.reshape(bsz * s, d)
    normed = layer_norm(x2, alpha, beta, eps=eps)
    y2 = sublayer(normed)
    out2 = residual_add(x2, y2, rate=rate, training=training, seed=seed)
    return out2.reshape(bsz, s, d)


# ---------------------------------------------------------------------------
# Pure-JAX reference (eval mode) for correctness checking
# ---------------------------------------------------------------------------
def _reference(x, alpha, beta, w, bias, eps=1e-6):
    mean = x.mean(axis=-1, keepdims=True)
    std = jnp.sqrt(((x - mean) ** 2).sum(-1, keepdims=True) / (x.shape[-1] - 1))
    ln = alpha[0] * (x - mean) / (std + eps) + beta[0]
    y = ln @ w + bias
    return x + y  # dropout is identity in eval mode


if __name__ == "__main__":
    key = jax.random.PRNGKey(0)
    B, S, D = 2, 8, 32

    kx, kw, kb = jax.random.split(key, 3)
    x = jax.random.normal(kx, (B, S, D), dtype=jnp.float32)

    # LayerNorm parameters (module init: ones / zeros, shape (1,))
    alpha = jnp.ones((1,), dtype=jnp.float32)
    beta = jnp.zeros((1,), dtype=jnp.float32)

    # Deterministic dense sublayer parameters
    w = jax.random.normal(kw, (D, D), dtype=jnp.float32) * 0.05
    bias = jax.random.normal(kb, (D,), dtype=jnp.float32) * 0.05

    # Fused fast path: LN + dense + dropout + residual in ONE kernel.
    out_fused = fused_residual_dense(x, w, bias, alpha, beta,
                                     eps=1e-6, rate=0.1, training=False, seed=0)
    out_fused = jax.block_until_ready(out_fused)

    # Generic path for arbitrary sublayer callables.
    sublayer = lambda h: h @ w + bias
    out_gen = residual_connection(x, sublayer, alpha, beta,
                                  eps=1e-6, rate=0.1, training=False, seed=0)
    out_gen = jax.block_until_ready(out_gen)

    ref = _reference(x, alpha, beta, w, bias)
    assert out_fused.shape == x.shape and out_fused.dtype == x.dtype
    assert jnp.allclose(out_fused, ref, atol=1e-4, rtol=1e-4), "fused mismatch"
    assert jnp.allclose(out_gen, ref, atol=1e-4, rtol=1e-4), "generic mismatch"

    print("KERNEL_OK")
</pallas_src>

<mosaic_0001>
module attributes {stable_mosaic.version = 11 : i64} {
  func.func @_fused_kernel(%arg0: i32, %arg1: i32, %arg2: memref<1xf32, #tpu.memory_space<smem>>, %arg3: memref<1xf32, #tpu.memory_space<smem>>, %arg4: memref<1xi32, #tpu.memory_space<smem>>, %arg5: memref<8x128xf32, #tpu.memory_space<vmem>>, %arg6: memref<128x128xf32, #tpu.memory_space<vmem>>, %arg7: memref<1x128xf32, #tpu.memory_space<vmem>>, %arg8: memref<8x128xf32, #tpu.memory_space<vmem>>, %arg9: memref<8x128xf32, #tpu.memory_space<vmem>>) attributes {dimension_semantics = [#tpu.dimension_semantics<parallel>, #tpu.dimension_semantics<arbitrary>], iteration_bounds = array<i64: 2, 1>, scalar_prefetch = 0 : i64, scratch_operands = 1 : i64, tpu.core_type = #tpu.core_type<tc>, window_params = [{transform_indices = @transform_0, window_bounds = array<i64: 1>}, {transform_indices = @transform_1, window_bounds = array<i64: 1>}, {transform_indices = @transform_2, window_bounds = array<i64: 1>}, {transform_indices = @transform_3, window_bounds = array<i64: 8, 128>}, {transform_indices = @transform_4, window_bounds = array<i64: 128, 128>}, {transform_indices = @transform_5, window_bounds = array<i64: 1, 128>}, {transform_indices = @transform_6, window_bounds = array<i64: 8, 128>}]} {
    %c0_i32 = arith.constant 0 : i32
    %0 = arith.cmpi eq, %arg1, %c0_i32 : i32
    %1 = arith.extui %0 : i1 to i32
    %c0_i32_0 = arith.constant 0 : i32
    %2 = arith.cmpi ne, %1, %c0_i32_0 : i32
    scf.if %2 {
      %c0_9 = arith.constant 0 : index
      %c0_10 = arith.constant 0 : index
      %15 = vector.load %arg5[%c0_9, %c0_10] : memref<8x128xf32, #tpu.memory_space<vmem>>, vector<8x128xf32>
      %c0_11 = arith.constant 0 : index
      %16 = memref.load %arg2[%c0_11] : memref<1xf32, #tpu.memory_space<smem>>
      %c0_12 = arith.constant 0 : index
      %17 = memref.load %arg3[%c0_12] : memref<1xf32, #tpu.memory_space<smem>>
      %cst_13 = arith.constant dense<0.000000e+00> : vector<8xf32>
      %18 = vector.multi_reduction <add>, %15, %cst_13 [1] : vector<8x128xf32> to vector<8xf32>
      %19 = vector.shape_cast %18 : vector<8xf32> to vector<8x1xf32>
      %cst_14 = arith.constant 3.125000e-02 : f32
      %20 = vector.broadcast %cst_14 : f32 to vector<8x1xf32>
      %21 = arith.mulf %19, %20 : vector<8x1xf32>
      %22 = vector.broadcast %21 : vector<8x1xf32> to vector<8x128xf32>
      %23 = arith.subf %15, %22 : vector<8x128xf32>
      %24 = tpu.iota {dimensions = array<i32: 1>} : vector<8x128xi32>
      %c32_i32 = arith.constant 32 : i32
      %25 = vector.broadcast %c32_i32 : i32 to vector<8x128xi32>
      %26 = arith.cmpi slt, %24, %25 : vector<8x128xi32>
      %cst_15 = arith.constant 0.000000e+00 : f32
      %27 = vector.broadcast %cst_15 : f32 to vector<8x128xf32>
      %28 = arith.select %26, %23, %27 : vector<8x128xi1>, vector<8x128xf32>
      %29 = arith.mulf %28, %28 : vector<8x128xf32>
      %cst_16 = arith.constant dense<0.000000e+00> : vector<8xf32>
      %30 = vector.multi_reduction <add>, %29, %cst_16 [1] : vector<8x128xf32> to vector<8xf32>
      %31 = vector.shape_cast %30 : vector<8xf32> to vector<8x1xf32>
      %cst_17 = arith.constant 0.0322580636 : f32
      %32 = vector.broadcast %cst_17 : f32 to vector<8x1xf32>
      %33 = arith.mulf %31, %32 : vector<8x1xf32>
      %34 = math.sqrt %33 : vector<8x1xf32>
      %cst_18 = arith.constant 9.99999997E-7 : f32
      %35 = vector.broadcast %cst_18 : f32 to vector<8x1xf32>
      %36 = arith.addf %34, %35 : vector<8x1xf32>
      %37 = tpu.reciprocal %36 : vector<8x1xf32> -> vector<8x1xf32>
      %38 = vector.broadcast %16 : f32 to vector<8x1xf32>
      %39 = arith.mulf %38, %37 : vector<8x1xf32>
      %40 = vector.broadcast %39 : vector<8x1xf32> to vector<8x128xf32>
      %41 = arith.mulf %28, %40 : vector<8x128xf32>
      %42 = vector.broadcast %17 : f32 to vector<8x128xf32>
      %43 = arith.addf %41, %42 : vector<8x128xf32>
      %c0_19 = arith.constant 0 : index
      %c0_20 = arith.constant 0 : index
      %44 = vector.load %arg9[%c0_19, %c0_20] : memref<8x128xf32, #tpu.memory_space<vmem>>, vector<8x128xf32>
      tpu.vector_store %arg9[%c0_19, %c0_20], %43 {strides = array<i32>} : memref<8x128xf32, #tpu.memory_space<vmem>>, vector<8x128xf32>,
    } else {
    }
    %c0 = arith.constant 0 : index
    %c0_1 = arith.constant 0 : index
    %3 = vector.load %arg9[%c0, %c0_1] : memref<8x128xf32, #tpu.memory_space<vmem>>, vector<8x128xf32>
    %c0_2 = arith.constant 0 : index
    %c0_3 = arith.constant 0 : index
    %4 = vector.load %arg6[%c0_2, %c0_3] : memref<128x128xf32, #tpu.memory_space<vmem>>, vector<128x128xf32>
    %cst = arith.constant dense<0.000000e+00> : vector<8x128xf32>
    %5 = tpu.matmul %3, %4, %cst {dimension_numbers = #tpu.dot_dimension_numbers<[1], [0], [0], [1], [0, 0, 1, 1], [], []>} : vector<8x128xf32>, vector<128x128xf32>, vector<8x128xf32> -> vector<8x128xf32>
    %c0_4 = arith.constant 0 : index
    %c0_5 = arith.constant 0 : index
    %6 = vector.load %arg7[%c0_4, %c0_5] : memref<1x128xf32, #tpu.memory_space<vmem>>, vector<1x128xf32>
    %7 = vector.broadcast %6 : vector<1x128xf32> to vector<8x128xf32>
    %8 = arith.addf %5, %7 : vector<8x128xf32>
    %c128_i32 = arith.constant 128 : i32
    %9 = arith.muli %arg1, %c128_i32 : i32
    %10 = tpu.assume_multiple %9, 128 : i32
    %c0_6 = arith.constant 0 : index
    %11 = arith.index_cast %10 : i32 to index
    %12 = vector.load %arg5[%c0_6, %11] : memref<8x128xf32, #tpu.memory_space<vmem>>, vector<8x128xf32>
    %13 = arith.addf %12, %8 : vector<8x128xf32>
    %c0_7 = arith.constant 0 : index
    %c0_8 = arith.constant 0 : index
    %14 = vector.load %arg8[%c0_7, %c0_8] : memref<8x128xf32, #tpu.memory_space<vmem>>, vector<8x128xf32>
    tpu.vector_store %arg8[%c0_7, %c0_8], %13 {strides = array<i32>} : memref<8x128xf32, #tpu.memory_space<vmem>>, vector<8x128xf32>,
    return
  }
  func.func @transform_0(%arg0: i32, %arg1: i32) -> i32 {
    %c0_i32 = arith.constant 0 : i32
    %c0_i32_0 = arith.constant 0 : i32
    return %c0_i32 : i32
  }
  func.func @transform_1(%arg0: i32, %arg1: i32) -> i32 {
    %c0_i32 = arith.constant 0 : i32
    %c0_i32_0 = arith.constant 0 : i32
    return %c0_i32 : i32
  }
  func.func @transform_2(%arg0: i32, %arg1: i32) -> i32 {
    %c0_i32 = arith.constant 0 : i32
    %c0_i32_0 = arith.constant 0 : i32
    return %c0_i32 : i32
  }
  func.func @transform_3(%arg0: i32, %arg1: i32) -> (i32, i32) {
    %c0_i32 = arith.constant 0 : i32
    %c0_i32_0 = arith.constant 0 : i32
    return %arg0, %c0_i32 : i32, i32
  }
  func.func @transform_4(%arg0: i32, %arg1: i32) -> (i32, i32) {
    %c0_i32 = arith.constant 0 : i32
    %c0_i32_0 = arith.constant 0 : i32
    return %c0_i32, %arg1 : i32, i32
  }
  func.func @transform_5(%arg0: i32, %arg1: i32) -> (i32, i32) {
    %c0_i32 = arith.constant 0 : i32
    %c0_i32_0 = arith.constant 0 : i32
    return %c0_i32, %arg1 : i32, i32
  }
  func.func @transform_6(%arg0: i32, %arg1: i32) -> (i32, i32) {
    %c0_i32 = arith.constant 0 : i32
    return %arg0, %arg1 : i32, i32
  }
}

</mosaic_0001>

<bundles_post_ra>
// kernel: tpu_custom_call.1
= control target key start
LH: loop header
LB: loop body
LE: loop exit
PB: predicated region body
PF: predicated region fallthrough
CT: control target
= control target key end

     0   :  { %s1096_s0 = inlined_call_operand.<no memory space> [shape: f32[1], index: 0, kind: input, shape index: {}]   ;;  %s1097_s1 = inlined_call_operand.<no memory space> [shape: f32[1], index: 1, kind: input, shape index: {}]   ;;  %s1098_s2 = inlined_call_operand.<no memory space> [shape: s32[1], index: 2, kind: input, shape index: {}]   ;;  %s1099_s3 = inlined_call_operand.hbm [shape: f32[16,128], index: 3, kind: input, shape index: {}]   ;;  %s1100_s4 = inlined_call_operand.hbm [shape: f32[128,128], index: 4, kind: input, shape index: {}]   ;;  %s1101_s5 = inlined_call_operand.vmem [shape: f32[1,128], index: 5, kind: input, shape index: {}]   ;;  %s1102_s6 = inlined_call_operand.hbm [shape: f32[16,128], index: 6, kind: output, shape index: {}]  }
   0x1   :  { %11 = sst [smem:[#allocation3]] %s1096_s0 }
   0x2   :  { %12 = sst [smem:[#allocation4]] %s1097_s1 }
   0x3   :  { %14 = vsyncpa [#allocation7], 0 }
   0x4   :  { %16 = vsyncpa [#allocation7 + $0x1], 0 }
   0x5   :  { %17 = vsyncpa [#allocation10], 0 }
   0x6   :  { %18 = vsyncpa [#allocation8], 0 }
   0x7   :  { %20 = vsyncpa [#allocation8 + $0x1], 0  ;;  %s912_s2 = smov 0   ;;  %s914_s25 = smov 0  }
   0x8   :  { %s916_s26 = smov 0   ;;  %s918_s27 = smov 0  }
   0x9   :  { %s920_s28 = smov 0   ;;  %s922_s0 = smov 0  }
   0xa LB: > { %s574_s1 = sadd.s32 4294967295, %s862_s0   ;;  %s575_s29 = sadd.s32 4294967294, %s862_s0   ;;  %s862_s0 = sphi %s922_s0, %s26_s0   ;;  %s858_s28 = sphi %s920_s28, %s1120_s28   ;;  %s854_s27 = sphi %s918_s27, %s1119_s27   ;;  %s850_s26 = sphi %s916_s26, %s1118_s26   ;;  %s846_s25 = sphi %s914_s25, %s1117_s25   ;;  %s842_s2 = sphi %s912_s2, %s1116_s2  }
   0xb   : > { %p121_p0 = scmp.ne.s32.totalorder %s846_s25, %s842_s2  ;;  %p946_p1 = scmp.eq.s32.totalorder %s574_s1, 0 }
   0xc   : > { %p950_p2 = scmp.eq.s32.totalorder %s574_s1, 1  ;;  %p205_p3 = scmp.eq.s32.totalorder %s575_s29, 1 }
   0xd   : > { %p956_p4 = por %p946_p1, %p121_p0  ;;  %p576_p5 = scmp.ge.s32.totalorder %s862_s0, 1 }
   0xe   : > { %p961_p6 = por %p205_p3, %p121_p0  ;;  %p212_p7 = scmp.lt.s32.totalorder %s862_s0, 3 }
   0xf   : > { %s1106_s8 = scalar_select %p956_p4, 1, 0 }
  0x10   : > { %s1107_s9 = scalar_select %p961_p6, 1, 0 }
  0x11   : > { %p966_p8 = pnand %p576_p5, %p212_p7  ;;  %s864_s11 = smov [#allocation9]  }
  0x12   : > { %s235_s12 = sshll.u32 %s864_s11, 4  ;;  %s38_s14 = sadd.s32 1, %s858_s28  ;;  %s236_s12 = int_to_ptr.vmem [resolvable:$true] %s235_s12 }
  0x13   : > { %p651_p9 = pneg %p966_p8  ;;  %s735_s15 = scalar_lea.vmem %s236_s12, 2048 }
  0x14   : > { %p736_p13 = scmp.ne.s32.totalorder %s236_s12, %s735_s15  ;;  %p743_p5 = scmp.lt.s32.totalorder %s236_s12, %s236_s12 }
  0x15   : > { %p975_p11 = pnand %p651_p9, %p946_p1  ;;  %p744_p7 = scmp.lt.s32.totalorder %s735_s15, %s735_s15 }
  0x17   : > { %p726_p12 = pneg %p975_p11  ;;  %p745_p6 = por %p744_p7, %p743_p5 }
  0x19   : > { %p738_p0 = pnand %p736_p13, %p726_p12 }
  0x1b   : > { %p739_p3 = pneg %p738_p0 }
  0x1d   : > { %p746_p4 = pnand %p745_p6, %p739_p3 }
  0x1f   : > { %749 = shalt.err (!%p746_p4)
}
  0x20   : > { %s865_s16 = smov 128   ;;  %s866_s17 = smov 8  }
  0x21   : > { %654 = dma.hbm_to_vmem [thread:$0]  (!%p975_p11), %s1100_s4, 2048, %s236_s12, [#allocation10], %s865_s16, %s865_s16, %s866_s17  }
  0x22   : > { %p40_p6 = scmp.ge.s32.totalorder %s38_s14, 2  ;;  %s108_s20 = sadd.s32 1, %s850_s26 }
  0x23   : > { %p115_p4 = scmp.ne.s32.totalorder %s850_s26, %s846_s25  ;;  %p116_p9 = scmp.eq.s32.totalorder %s862_s0, 0 }
  0x24   : > { %s1122_s14 = smov (%p40_p6, %s38_s14), 0  ;;  %p664_p0 = scmp.lt.s32.totalorder %s862_s0, 2 }
  0x25   : > { %p993_p12 = por %p116_p9, %p115_p4  ;;  %p999_p13 = por %p950_p2, %p115_p4 }
  0x26   : > { %s105_s23 = ssub.s32 %s858_s28, %s1122_s14  ;;  %s255_s24 = sand.u32 1, %s850_s26  }
  0x27   : > { %p106_p11 = scmp.eq.s32.totalorder %s105_s23, 0  ;;  %s580_s1 = sshll.u32 %s255_s24, 3 }
  0x28   : > { %s581_s11 = sshll.u32 %s858_s28, 7  ;;  %s259_s16 = scalar_lea.vmem [#allocation6], %s580_s1 }
  0x29   : > { %s1008_s29 = scalar_select %p106_p11, %s850_s26, %s108_s20  }
  0x2a   : > { %s264_s15 = scalar_lea.hbm %s1099_s3, %s581_s11  ;;  %s266_s17 = sshll.u32 %s259_s16, 4  ;;  %s267_s17 = int_to_ptr.vmem [resolvable:$true] %s266_s17 }
  0x2b   : > { %p1016_p2 = pnand %p664_p0, %p993_p12  ;;  %s256_s18 = scalar_lea.sflag [#allocation7], %s255_s24 }
  0x2c   : > { %s763_s19 = scalar_lea.vmem %s267_s17, 128  ;;  %s867_s20 = smov [#allocation6]  }
  0x2d   : > { %p752_p3 = pneg %p1016_p2  ;;  %p764_p5 = scmp.ne.s32.totalorder %s267_s17, %s763_s19 }
  0x2e   : > { %s768_s23 = sshll.u32 %s867_s20, 4  ;;  %s769_s23 = int_to_ptr.vmem [resolvable:$false] %s768_s23 }
  0x2f   : > { %p766_p7 = pnand %p764_p5, %p752_p3  ;;  %s770_s11 = scalar_lea.vmem %s769_s23, 256 }
  0x30   : > { %p771_p4 = scmp.lt.s32.totalorder %s267_s17, %s769_s23  ;;  %p772_p9 = scmp.lt.s32.totalorder %s770_s11, %s763_s19 }
  0x31   : > { %p767_p6 = pneg %p766_p7 }
  0x32   : > { %p773_p11 = por %p772_p9, %p771_p4 }
  0x34   : > { %p774_p10 = pnand %p773_p11, %p767_p6 }
  0x36   : > { %777 = shalt.err (!%p774_p10)
}
  0x37   : > { %658 = dma.hbm_to_vmem [thread:$0]  (!%p1016_p2), %s264_s15, 128, %s267_s17, %s256_s18  }
  0x38   : > { %275 = sbr.rel (%p966_p8) target bundleno = 600 (0x258), region = 44  ;;  %s1027_s21 = sand.u32 (!%p966_p8), 1, %s846_s25  }
  0x39   : > { %s583_s24 = sshll.u32 (!%p966_p8), %s1027_s21, 3  ;;  %s278_s1 = scalar_lea.sflag (!%p966_p8), [#allocation7], %s1027_s21 }
  0x3a   : > { %s281_s12 = scalar_lea.vmem (!%p966_p8), [#allocation6], %s583_s24  ;;  %p1113_p12 = scmp.ne.s32.totalorder (!%p966_p8), %s1106_s8, 0 }
  0x3d   : > { %829 = dma.done.wait (%p1113_p12), %s278_s1, 128  }
  0x3e   : > { %831 = vsyncadd (%p1113_p12), %s278_s1, 4294967168 }
  0x3f   : > { %833 = dma.done.wait (%p946_p1), [#allocation10], 2048  }
  0x40   : > { %835 = vsyncadd (%p946_p1), [#allocation10], 4294965248  ;;  %v1041_v0 = vld [vmem:[%s281_s12] sm:$0xff]  ;;  %v331_v1 = vlaneseq  ;;  %v868_v8 = vmov 0.0   ;;  %v368_v11 = vld [vmem:[#allocation9 + $0x68] sm:$0xff]  ;;  %vm869_vm1 = vmmov 0  }
  0x41   : > { %327 = vadd.xlane.f32.xlu0 %v1041_v0  ;;  %608 = vmatprep.subr.mxu0 %v868_v8  ;;  %v370_v9 = vld [vmem:[#allocation9 + $0x78] sm:$0xff]  ;;  %v369_v10 = vld [vmem:[#allocation9 + $0x70] sm:$0xff]  ;;  %v367_v12 = vld [vmem:[#allocation9 + $0x60] sm:$0xff]  ;;  %s325_s30 = sld [smem:[#allocation3]]  ;;  %s588_s15 = sshll.u32 %s854_s27, 7 }
  0x42   : > { %v332_v2 = vand.u32 127, %v331_v1  ;;  %609 = vmatpush3.msra.mxu0 %v370_v9  ;;  %v366_v13 = vld [vmem:[#allocation9 + $0x58] sm:$0xff]  ;;  %v365_v14 = vld [vmem:[#allocation9 + $0x50] sm:$0xff]  ;;  %v364_v15 = vld [vmem:[#allocation9 + $0x48] sm:$0xff]  ;;  %640 = vmatprep.mubr.msk.f32.mxu0 %vm869_vm1, %v868_v8  ;;  %s326_s8 = sld [smem:[#allocation4]]  ;;  %s316_s16 = scalar_lea.vmem [#allocation11], %s583_s24 }
  0x43   : > { %610 = vmatprep.subr.mxu0 %v868_v8  ;;  %v363_v16 = vld [vmem:[#allocation9 + $0x40] sm:$0xff]  ;;  %v362_v17 = vld [vmem:[#allocation9 + $0x38] sm:$0xff]  ;;  %v361_v18 = vld [vmem:[#allocation9 + $0x30] sm:$0xff]  ;;  %s470_s17 = sshll.u32 %s316_s16, 4  ;;  %s468_s19 = scalar_lea.hbm %s1102_s6, %s588_s15  ;;  %s471_s17 = int_to_ptr.vmem [resolvable:$true] %s470_s17 }
  0x44   : > { %vm333_vm0 = vcmp.lt.s32.totalorder %v332_v2, 32  ;;  %611 = vmatpush3.msra.mxu0 %v369_v10  ;;  %v360_v19 = vld [vmem:[#allocation9 + $0x28] sm:$0xff]  ;;  %v359_v20 = vld [vmem:[#allocation9 + $0x20] sm:$0xff]  ;;  %v358_v21 = vld [vmem:[#allocation9 + $0x18] sm:$0xff]  ;;  %s456_s20 = scalar_lea.sflag [#allocation8], %s1027_s21  ;;  %s778_s23 = scalar_lea.vmem %s471_s17, 128 }
  0x45   : > { %612 = vmatprep.subr.mxu0 %v868_v8  ;;  %v357_v22 = vld [vmem:[#allocation9 + $0x10] sm:$0xff]  ;;  %v356_v23 = vld [vmem:[#allocation9 + $0x8] sm:$0xff]  ;;  %v355_v24 = vld [vmem:[#allocation9] sm:$0xff]  ;;  %p779_p1 = scmp.ne.s32.totalorder %s471_s17, %s778_s23  ;;  %s870_s27 = smov [#allocation11]  }
  0x46   : > { %613 = vmatpush3.msra.mxu0 %v368_v11  ;;  %v586_v39 = vld [vmem:[%s1101_s5] ss:$0 sm:$0xff]  ;;  %s782_s11 = sshll.u32 %s870_s27, 4  ;;  %s783_s11 = int_to_ptr.vmem [resolvable:$false] %s782_s11 }
  0x47   : > { %614 = vmatprep.subr.mxu0 %v868_v8  ;;  %v348_v33 = vstv %s325_s30  ;;  %p780_p8 = pnand %p779_p1, %p999_p13  ;;  %s784_s24 = scalar_lea.vmem %s783_s11, 256 }
  0x48   : > { %615 = vmatpush3.msra.mxu0 %v367_v12  ;;  %v351_v36 = vstv %s326_s8  ;;  %p785_p0 = scmp.lt.s32.totalorder %s471_s17, %s783_s11  ;;  %p786_p2 = scmp.lt.s32.totalorder %s784_s24, %s778_s23 }
  0x49   : > { %616 = vmatprep.subr.mxu0 %v868_v8  ;;  %p781_p10 = pneg %p780_p8 }
  0x4a   : > { %617 = vmatpush3.msra.mxu0 %v366_v13  ;;  %p787_p3 = por %p786_p2, %p785_p0 }
  0x4b   : > { %618 = vmatprep.subr.mxu0 %v868_v8 }
  0x4c   : > { %619 = vmatpush3.msra.mxu0 %v365_v14  ;;  %p788_p5 = pnand %p787_p3, %p781_p10 }
  0x4d   : > { %620 = vmatprep.subr.mxu0 %v868_v8 }
  0x4e   : > { %621 = vmatpush3.msra.mxu0 %v364_v15 }
  0x4f   : > { %622 = vmatprep.subr.mxu0 %v868_v8 }
  0x50   : > { %623 = vmatpush3.msra.mxu0 %v363_v16 }
  0x51   : > { %624 = vmatprep.subr.mxu0 %v868_v8 }
  0x52   : > { %625 = vmatpush3.msra.mxu0 %v362_v17 }
  0x53   : > { %626 = vmatprep.subr.mxu0 %v868_v8 }
  0x54   : > { %627 = vmatpush3.msra.mxu0 %v361_v18 }
  0x55   : > { %628 = vmatprep.subr.mxu0 %v868_v8 }
  0x56   : > { %629 = vmatpush3.msra.mxu0 %v360_v19 }
  0x57   : > { %630 = vmatprep.subr.mxu0 %v868_v8 }
  0x58   : > { %631 = vmatpush3.msra.mxu0 %v359_v20 }
  0x59   : > { %632 = vmatprep.subr.mxu0 %v868_v8 }
  0x5a   : > { %633 = vmatpush3.msra.mxu0 %v358_v21 }
  0x5b   : > { %634 = vmatprep.subr.mxu0 %v868_v8 }
  0x5c   : > { %635 = vmatpush3.msra.mxu0 %v357_v22 }
  0x5d   : > { %636 = vmatprep.subr.mxu0 %v868_v8 }
  0x5e   : > { %637 = vmatpush3.msra.mxu0 %v356_v23 }
  0x5f   : > { %638 = vmatprep.subr.mxu0 %v868_v8 }
  0x60   : > { %639 = vmatpush3.msra.mxu0 %v355_v24 }
  0xca   : > { %v328_v3 = vpop.xlane.xlu0 %327 }
  0xcb   : > { %v329_v4 = vmul.f32 0.03125, %v328_v3 }
  0xcd   : > { %v330_v5 = vsub.f32 %v1041_v0, %v329_v4 }
  0xcf   : > { %v1045_v6 = vsel %vm333_vm0, %v330_v5, 0.0 }
  0xd0   : > { %v335_v7 = vmul.f32 %v1045_v6, %v1045_v6 }
  0xd2   : > { %336 = vadd.xlane.f32.xlu0 %v335_v7 }
 0x15b   : > { %v337_v25 = vpop.xlane.xlu0 %336 }
 0x15c   : > { %v338_v26 = vmul.f32 0.032258064, %v337_v25 }
 0x15e   : > { %720 = vrsqrt.f32 %v338_v26  ;;  %vm341_vm2 = vcmp.eq.f32.partialorder %v338_v26, inf  ;;  %v344_v29 = vand.u32 2147483648, %v338_v26  ;;  %vm343_vm3 = vcmp.eq.f32.partialorder %v338_v26, 0.0 }
 0x16b   : > { %v721_v27 = vpop.eup %720 }
 0x16c   : > { %v340_v28 = vmul.f32 %v721_v27, %v338_v26 }
 0x16e   : > { %v342_v30 = vsel %vm341_vm2, %v338_v26, %v340_v28 }
 0x16f   : > { %v345_v31 = vsel %vm343_vm3, %v344_v29, %v342_v30 }
 0x170   : > { %v346_v32 = vadd.f32 1e-06, %v345_v31 }
 0x172   : > { %722 = vrcp.f32 %v346_v32 }
 0x17f   : > { %v723_v34 = vpop.eup %722 }
 0x180   : > { %v349_v35 = vmul.f32 %v723_v34, %v348_v33 }
 0x182   : > { %v350_v37 = vmul.f32 %v349_v35, %v1045_v6 }
 0x184   : > { %v352_v38 = vadd.f32 %v351_v36, %v350_v37 }
 0x186   : > { %641 = vmatmul.mubr.f32.vlgmr.msra.gmra.mxu0 %v352_v38 }
 0x246   : > { %v444_v40 = vpop.f32.mrf.mxu0 }
 0x247   : > { %v445_v41 = vadd.f32 %v586_v39, %v444_v40 }
 0x248   : > { %v642_v42 = vpop.f32.mrf.mxu0 }
 0x249   : > { %v453_v43 = vadd.f32 %v445_v41, %v1041_v0 }
 0x24b   : > { %454 = vst [vmem:[%s316_s16] sm:$0xff] %v453_v43 }
 0x24c   : > { %791 = shalt.err (!%p788_p5)
}
 0x24d   : > { %s792_s1 = scalar_lea.hbm %s468_s19, 128  ;;  %s796_s30 = scalar_lea.hbm %s1102_s6, 256 }
 0x24e   : > { %p793_p7 = scmp.ne.s32.totalorder %s468_s19, %s792_s1  ;;  %p797_p9 = scmp.lt.s32.totalorder %s468_s19, %s1102_s6 }
 0x24f   : > { %p798_p11 = scmp.lt.s32.totalorder %s796_s30, %s792_s1 }
 0x250   : > { %p794_p6 = pnand %p793_p7, %p999_p13 }
 0x251   : > { %p799_p12 = por %p798_p11, %p797_p9 }
 0x252   : > { %p795_p4 = pneg %p794_p6 }
 0x254   : > { %p800_p1 = pnand %p799_p12, %p795_p4 }
 0x256   : > { %803 = shalt.err (!%p800_p1)
}
 0x257   : > { %649 = dma.vmem_to_hbm [thread:$0]  (%p999_p13), %s471_s17, 128, %s468_s19, %s456_s20  }
 0x258 PF: > { %s482_s13 = sand.u32 1, %s842_s2   ;;  %p1114_p8 = scmp.ne.s32.totalorder %s1107_s9, 0 }
 0x259   : > { %p1115_p10 = scmp.ge.s32.totalorder %s862_s0, 2  ;;  %s483_s15 = scalar_lea.sflag [#allocation8], %s482_s13 }
 0x25b   : > { %p660_p0 = pnand %p1115_p10, %p1114_p8 }
 0x25d   : > { %p661_p2 = pneg %p660_p0 }
 0x25f   : > { %837 = dma.done.wait (%p661_p2), %s483_s15, 128  }
 0x260   : > { %839 = vsyncadd (%p661_p2), %s483_s15, 4294967168  ;;  %s26_s0 = sadd.s32 1, %s862_s0   ;;  %s1116_s2 = smov %s846_s25 }
 0x261   : > { %p23_p3 = scmp.ge.s32.totalorder %s26_s0, 4   ;;  %s1117_s25 = smov %s850_s26 }
 0x262   : > { %s1118_s26 = smov %s1008_s29  ;;  %s1119_s27 = smov %s858_s28 }
 0x263   : > { %s1120_s28 = smov %s1122_s14  ;;  %25 = sbr.rel (!%p23_p3) target bundleno = 10 (0xa), region = 102 }
 0x268   :  { %488 = vsyncpa [#allocation7], 1 }
 0x269   :  { %490 = vsyncpa [#allocation7 + $0x1], 1 }
 0x26a   :  { %491 = vsyncpa [#allocation10], 1 }
 0x26b   :  { %492 = vsyncpa [#allocation8], 1 }
 0x26c   :  { %494 = vsyncpa [#allocation8 + $0x1], 1 }

</bundles_post_ra>
